<compile_context>
chip_gen: v6e
topology: v6e:2x2x1
jax: 0.10.0
libtpu: 0.0.40
codegen_flags: <defaults>
</compile_context>

<pallas_src>
import functools

import jax
import jax.numpy as jnp
from jax.experimental import pallas as pl
from jax.experimental.pallas import tpu as pltpu


def _focal_ce_partial_kernel(x_ref, t_ref, out_ref, *, hw, tile_hw, j_tiles):
    """One grid step: accumulate per-pixel log p_{target} into a lane-dense
    vector accumulator (the (n, p) output block, resident across the j axis).

    x_ref  : (1, C, tile_hw)    logits tile  (classes on sublanes, pixels on lanes)
    t_ref  : (1, 1, tile_hw)    int32 targets tile
    out_ref: (1, 1, 1, tile_hw) float32 per-lane partial sums
    """
    p = pl.program_id(1)
    j = pl.program_id(2)

    @pl.when(j == 0)
    def _():
        out_ref[...] = jnp.zeros_like(out_ref)

    x = x_ref[0].astype(jnp.float32)        # (C, T)
    t = t_ref[0]                            # (1, T) int32

    # Numerically-stable per-pixel log-softmax over the (small) class/sublane
    # axis (cross-sublane max/sum run on the XLU; exp goes to the EUP slot).
    m = jnp.max(x, axis=0, keepdims=True)                                # (1, T)
    lse = m + jnp.log(jnp.sum(jnp.exp(x - m), axis=0, keepdims=True))    # (1, T)

    # Gather the target-class logit via a one-hot select (no dynamic gather on
    # the TPU vector path).
    # TODO(synk): out-of-range labels (e.g. Cityscapes 255 void) silently
    # contribute a 0 logit; PyTorch cross_entropy without ignore_index errors.
    cls = jax.lax.broadcasted_iota(jnp.int32, x.shape, 0)                # (C, T)
    x_t = jnp.sum(jnp.where(cls == t, x, 0.0), axis=0, keepdims=True)    # (1, T)

    logpt = x_t - lse                                                    # (1, T)

    # Mask lanes past the true number of pixels: covers the partial last tile
    # within HW *and* fully out-of-range tiles from uneven chunk splits (whose
    # block index Pallas clamps to a valid tile -> data is garbage but finite,
    # then zeroed here).
    col = (p * j_tiles + j) * tile_hw + jax.lax.broadcasted_iota(
        jnp.int32, logpt.shape, 1)
    logpt = jnp.where(col < hw, logpt, 0.0)

    # Pure lane-dense VPU add into the resident vector accumulator.
    out_ref[...] += logpt[None, None]                                    # (1,1,1,T)


def focal_loss_2d(logits_nchw, target, gamma=2, weight=None,
                  size_average=True, tile_hw=32768, hw_chunks=2):
    """JAX/Pallas equivalent of FocalLoss2d.forward(input, target)."""
    del weight  # never handed to cross_entropy by the reference forward

    N, C, H, W = logits_nchw.shape
    HW = H * W
    M = N * HW

    # Accept (N, H, W) or (N, 1, H, W) targets (the reference's 3-D / 4-D paths
    # both flatten to one label per pixel).
    if target.ndim == 4:
        target = target.reshape(N, H, W)

    # NCHW is already (N, C, H*W)-contiguous: consume it directly (no transpose,
    # no second HBM copy). Free metadata reshapes only.
    x = logits_nchw.reshape(N, C, HW)
    t = target.reshape(N, 1, HW).astype(jnp.int32)

    # Lane-dense tile along H*W; multiple of 128 unless it covers all of HW.
    if HW <= tile_hw:
        tile = HW
    else:
        tile = max(128, (tile_hw // 128) * 128)
    num_tiles = pl.cdiv(HW, tile)
    # Extra 'parallel' chunk axis over the pixel range (second TensorCore on v7x).
    p_chunks = max(1, min(hw_chunks, num_tiles))
    j_tiles = pl.cdiv(num_tiles, p_chunks)

    kernel = functools.partial(_focal_ce_partial_kernel,
                               hw=HW, tile_hw=tile, j_tiles=j_tiles)

    partials = pl.pallas_call(
        kernel,
        out_shape=jax.ShapeDtypeStruct((N, p_chunks, 1, tile), jnp.float32),
        grid_spec=pltpu.PrefetchScalarGridSpec(
            num_scalar_prefetch=0,
            grid=(N, p_chunks, j_tiles),
            in_specs=[
                pl.BlockSpec((1, C, tile), lambda n, p, j: (n, 0, p * j_tiles + j)),
                pl.BlockSpec((1, 1, tile), lambda n, p, j: (n, 0, p * j_tiles + j)),
            ],
            out_specs=pl.BlockSpec((1, 1, 1, tile), lambda n, p, j: (n, p, 0, 0)),
        ),
        compiler_params=pltpu.CompilerParams(
            dimension_semantics=("parallel", "parallel", "arbitrary")),
    )(x, t)

    # logpt = -F.cross_entropy(input, target) with default 'mean' reduction.
    logpt = jnp.sum(partials) / jnp.float32(M)
    pt = jnp.exp(logpt)
    loss = -((1.0 - pt) ** gamma) * logpt

    # loss is a scalar; .mean() and .sum() of a scalar are the scalar itself,
    # so size_average does not change the value (matches the reference).
    return loss


if __name__ == "__main__":
    key = jax.random.PRNGKey(0)
    k_logits, k_target = jax.random.split(key)

    # Small Cityscapes-like synthetic problem: N=2, C=4 classes, 16x16 spatial.
    N, C, H, W = 2, 4, 16, 16
    logits = jax.random.normal(k_logits, (N, C, H, W), dtype=jnp.float32)
    target = jax.random.randint(k_target, (N, H, W), 0, C, dtype=jnp.int32)

    # Deterministic class weights for parity with __init__ (unused by forward,
    # exactly as in the reference which never hands them to cross_entropy).
    class_weight = jnp.ones((C,), dtype=jnp.float32)

    loss = focal_loss_2d(logits, target, gamma=2, weight=class_weight,
                         size_average=True)
    loss = jax.block_until_ready(loss)

    # Pure-JAX reference (same math as F.cross_entropy mean + focal transform).
    x2 = logits.reshape(N, C, H * W).transpose(0, 2, 1).reshape(-1, C)
    t2 = target.reshape(-1)
    lse = jax.nn.logsumexp(x2, axis=-1)
    x_t = jnp.take_along_axis(x2, t2[:, None], axis=-1)[:, 0]
    logpt_ref = jnp.mean(x_t - lse)
    pt_ref = jnp.exp(logpt_ref)
    loss_ref = -((1.0 - pt_ref) ** 2) * logpt_ref
    assert jnp.abs(loss - loss_ref) < 1e-5, (float(loss), float(loss_ref))

    print("KERNEL_OK")
</pallas_src>

<mosaic_0001>
module attributes {stable_mosaic.version = 11 : i64} {
  func.func @_focal_ce_partial_kernel(%arg0: i32, %arg1: i32, %arg2: i32, %arg3: memref<1x4x256xf32, #tpu.memory_space<vmem>>, %arg4: memref<1x1x256xi32, #tpu.memory_space<vmem>>, %arg5: memref<1x1x1x256xf32, #tpu.memory_space<vmem>>) attributes {dimension_semantics = [#tpu.dimension_semantics<parallel>, #tpu.dimension_semantics<parallel>, #tpu.dimension_semantics<arbitrary>], iteration_bounds = array<i64: 2, 1, 1>, scalar_prefetch = 0 : i64, scratch_operands = 0 : i64, tpu.core_type = #tpu.core_type<tc>, window_params = [{transform_indices = @transform_0, window_bounds = array<i64: 1, 4, 256>}, {transform_indices = @transform_1, window_bounds = array<i64: 1, 1, 256>}, {transform_indices = @transform_2, window_bounds = array<i64: 1, 1, 1, 256>}]} {
    %c0_i32 = arith.constant 0 : i32
    %0 = arith.cmpi eq, %arg2, %c0_i32 : i32
    %1 = arith.extui %0 : i1 to i32
    %c0_i32_0 = arith.constant 0 : i32
    %2 = arith.cmpi ne, %1, %c0_i32_0 : i32
    scf.if %2 {
      %cst_19 = arith.constant 0.000000e+00 : f32
      %38 = vector.broadcast %cst_19 : f32 to vector<1x1x1x256xf32>
      %c0_20 = arith.constant 0 : index
      %c0_21 = arith.constant 0 : index
      %c0_22 = arith.constant 0 : index
      %c0_23 = arith.constant 0 : index
      %39 = vector.load %arg5[%c0_20, %c0_21, %c0_22, %c0_23] : memref<1x1x1x256xf32, #tpu.memory_space<vmem>>, vector<1x1x1x256xf32>
      tpu.vector_store %arg5[%c0_20, %c0_21, %c0_22, %c0_23], %38 {strides = array<i32>} : memref<1x1x1x256xf32, #tpu.memory_space<vmem>>, vector<1x1x1x256xf32>,
    } else {
    }
    %c0 = arith.constant 0 : index
    %c0_1 = arith.constant 0 : index
    %c0_2 = arith.constant 0 : index
    %3 = vector.load %arg3[%c0, %c0_1, %c0_2] : memref<1x4x256xf32, #tpu.memory_space<vmem>>, vector<1x4x256xf32>
    %4 = vector.shape_cast %3 : vector<1x4x256xf32> to vector<4x256xf32>
    %c0_3 = arith.constant 0 : index
    %c0_4 = arith.constant 0 : index
    %c0_5 = arith.constant 0 : index
    %5 = vector.load %arg4[%c0_3, %c0_4, %c0_5] : memref<1x1x256xi32, #tpu.memory_space<vmem>>, vector<1x1x256xi32>
    %6 = vector.shape_cast %5 : vector<1x1x256xi32> to vector<1x256xi32>
    %cst = arith.constant dense<0xFF800000> : vector<256xf32>
    %7 = vector.multi_reduction <maximumf>, %4, %cst [0] : vector<4x256xf32> to vector<256xf32>
    %8 = vector.shape_cast %7 : vector<256xf32> to vector<1x256xf32>
    %9 = vector.broadcast %8 : vector<1x256xf32> to vector<4x256xf32>
    %10 = arith.subf %4, %9 : vector<4x256xf32>
    %11 = math.exp %10 : vector<4x256xf32>
    %cst_6 = arith.constant dense<0.000000e+00> : vector<256xf32>
    %12 = vector.multi_reduction <add>, %11, %cst_6 [0] : vector<4x256xf32> to vector<256xf32>
    %13 = vector.shape_cast %12 : vector<256xf32> to vector<1x256xf32>
    %14 = math.log %13 : vector<1x256xf32>
    %15 = arith.addf %8, %14 : vector<1x256xf32>
    %16 = tpu.iota {dimensions = array<i32: 0>} : vector<4x256xi32>
    %17 = vector.broadcast %6 : vector<1x256xi32> to vector<4x256xi32>
    %18 = arith.cmpi eq, %16, %17 : vector<4x256xi32>
    %cst_7 = arith.constant 0.000000e+00 : f32
    %19 = vector.broadcast %cst_7 : f32 to vector<4x256xf32>
    %20 = arith.select %18, %4, %19 : vector<4x256xi1>, vector<4x256xf32>
    %cst_8 = arith.constant dense<0.000000e+00> : vector<256xf32>
    %21 = vector.multi_reduction <add>, %20, %cst_8 [0] : vector<4x256xf32> to vector<256xf32>
    %22 = vector.shape_cast %21 : vector<256xf32> to vector<1x256xf32>
    %23 = arith.subf %22, %15 : vector<1x256xf32>
    %c1_i32 = arith.constant 1 : i32
    %24 = arith.muli %arg1, %c1_i32 : i32
    %25 = arith.addi %24, %arg2 : i32
    %c256_i32 = arith.constant 256 : i32
    %26 = arith.muli %25, %c256_i32 : i32
    %27 = tpu.iota {dimensions = array<i32: 1>} : vector<1x256xi32>
    %28 = vector.broadcast %26 : i32 to vector<1x256xi32>
    %29 = arith.addi %28, %27 : vector<1x256xi32>
    %c256_i32_9 = arith.constant 256 : i32
    %30 = vector.broadcast %c256_i32_9 : i32 to vector<1x256xi32>
    %31 = arith.cmpi slt, %29, %30 : vector<1x256xi32>
    %cst_10 = arith.constant 0.000000e+00 : f32
    %32 = vector.broadcast %cst_10 : f32 to vector<1x256xf32>
    %33 = arith.select %31, %23, %32 : vector<1x256xi1>, vector<1x256xf32>
    %c0_11 = arith.constant 0 : index
    %c0_12 = arith.constant 0 : index
    %c0_13 = arith.constant 0 : index
    %c0_14 = arith.constant 0 : index
    %34 = vector.load %arg5[%c0_11, %c0_12, %c0_13, %c0_14] : memref<1x1x1x256xf32, #tpu.memory_space<vmem>>, vector<1x1x1x256xf32>
    %35 = vector.shape_cast %33 : vector<1x256xf32> to vector<1x1x1x256xf32>
    %36 = arith.addf %34, %35 : vector<1x1x1x256xf32>
    %c0_15 = arith.constant 0 : index
    %c0_16 = arith.constant 0 : index
    %c0_17 = arith.constant 0 : index
    %c0_18 = arith.constant 0 : index
    %37 = vector.load %arg5[%c0_15, %c0_16, %c0_17, %c0_18] : memref<1x1x1x256xf32, #tpu.memory_space<vmem>>, vector<1x1x1x256xf32>
    tpu.vector_store %arg5[%c0_15, %c0_16, %c0_17, %c0_18], %36 {strides = array<i32>} : memref<1x1x1x256xf32, #tpu.memory_space<vmem>>, vector<1x1x1x256xf32>,
    return
  }
  func.func @transform_0(%arg0: i32, %arg1: i32, %arg2: i32) -> (i32, i32, i32) {
    %c1_i32 = arith.constant 1 : i32
    %0 = arith.muli %arg1, %c1_i32 : i32
    %1 = arith.addi %0, %arg2 : i32
    %c0_i32 = arith.constant 0 : i32
    %c0_i32_0 = arith.constant 0 : i32
    return %arg0, %c0_i32, %1 : i32, i32, i32
  }
  func.func @transform_1(%arg0: i32, %arg1: i32, %arg2: i32) -> (i32, i32, i32) {
    %c1_i32 = arith.constant 1 : i32
    %0 = arith.muli %arg1, %c1_i32 : i32
    %1 = arith.addi %0, %arg2 : i32
    %c0_i32 = arith.constant 0 : i32
    %c0_i32_0 = arith.constant 0 : i32
    return %arg0, %c0_i32, %1 : i32, i32, i32
  }
  func.func @transform_2(%arg0: i32, %arg1: i32, %arg2: i32) -> (i32, i32, i32, i32) {
    %c0_i32 = arith.constant 0 : i32
    %c0_i32_0 = arith.constant 0 : i32
    %c0_i32_1 = arith.constant 0 : i32
    return %arg0, %arg1, %c0_i32, %c0_i32_0 : i32, i32, i32, i32
  }
}

</mosaic_0001>

<bundles_post_ra>
// kernel: tpu_custom_call.1
= control target key start
LH: loop header
LB: loop body
LE: loop exit
PB: predicated region body
PF: predicated region fallthrough
CT: control target
= control target key end

     0   :  { %7 = vsyncpa [#allocation3], 0  ;;  %s942_s0 = inlined_call_operand.hbm [shape: f32[2,4,256], index: 0, kind: input, shape index: {}]   ;;  %s943_s1 = inlined_call_operand.hbm [shape: s32[2,1,256], index: 1, kind: input, shape index: {}]   ;;  %s944_s2 = inlined_call_operand.hbm [shape: f32[2,1,1,256], index: 2, kind: output, shape index: {}]  }
   0x1   :  { %9 = vsyncpa [#allocation3 + $0x1], 0 }
   0x2   :  { %10 = vsyncpa [#allocation6], 0 }
   0x3   :  { %12 = vsyncpa [#allocation6 + $0x1], 0 }
   0x4   :  { %13 = vsyncpa [#allocation4], 0 }
   0x5   :  { %15 = vsyncpa [#allocation4 + $0x1], 0  ;;  %s755_s9 = smov 0   ;;  %s757_s10 = smov 0  }
   0x6   :  { %s759_s11 = smov 0   ;;  %s761_s12 = smov 0  }
   0x7   :  { %s763_s13 = smov 0   ;;  %s765_s14 = smov 0  }
   0x8 LB: > { %s495_s15 = sadd.s32 4294967295, %s733_s14   ;;  %s496_s16 = sadd.s32 4294967294, %s733_s14   ;;  %s733_s14 = sphi %s765_s14, %s21_s14   ;;  %s729_s13 = sphi %s763_s13, %s958_s13   ;;  %s725_s12 = sphi %s761_s12, %s957_s12   ;;  %s721_s11 = sphi %s759_s11, %s956_s11   ;;  %s717_s10 = sphi %s757_s10, %s955_s10   ;;  %s713_s9 = sphi %s755_s9, %s954_s9  }
   0x9   : > { %s40_s17 = sadd.s32 1, %s729_s13  ;;  %s51_s18 = sadd.s32 1, %s721_s11 }
   0xa   : > { %p42_p0 = scmp.ge.s32.totalorder %s40_s17, 2  ;;  %p58_p1 = scmp.ne.s32.totalorder %s721_s11, %s717_s10 }
   0xb   : > { %p59_p2 = scmp.eq.s32.totalorder %s733_s14, 0  ;;  %p64_p3 = scmp.ne.s32.totalorder %s717_s10, %s713_s9 }
   0xc   : > { %s960_s17 = smov (%p42_p0, %s40_s17), 0  ;;  %p65_p5 = scmp.eq.s32.totalorder %s495_s15, 0 }
   0xd   : > { %p796_p4 = por %p59_p2, %p58_p1  ;;  %s46_s20 = ssub.s32 %s729_s13, %s960_s17 }
   0xe   : > { %p120_p6 = scmp.eq.s32.totalorder %s495_s15, 1  ;;  %p49_p7 = scmp.eq.s32.totalorder %s46_s20, 0 }
   0xf   : > { %p802_p8 = por %p65_p5, %p64_p3  ;;  %p126_p10 = scmp.eq.s32.totalorder %s496_s16, 1 }
  0x10   : > { %p806_p9 = por %p120_p6, %p58_p1  ;;  %p534_p13 = scmp.lt.s32.totalorder %s733_s14, 2 }
  0x11   : > { %s811_s23 = scalar_select %p49_p7, %s721_s11, %s51_s18  }
  0x12   : > { %p813_p11 = por %p126_p10, %p64_p3  ;;  %s820_s25 = sand.u32 1, %s721_s11  }
  0x13   : > { %s499_s26 = sshll.u32 %s820_s25, 3  ;;  %s514_s27 = sshll.u32 %s729_s13, 7 }
  0x14   : > { %s159_s30 = scalar_lea.hbm %s942_s0, %s514_s27  ;;  %s150_s3 = scalar_lea.vmem [#allocation2], %s499_s26 }
  0x15   : > { %s161_s4 = sshll.u32 %s150_s3, 4  ;;  %p829_p0 = pnand %p534_p13, %p796_p4  ;;  %s162_s4 = int_to_ptr.vmem [resolvable:$true] %s161_s4 }
  0x16   : > { %p505_p1 = scmp.ge.s32.totalorder %s733_s14, 1  ;;  %p188_p2 = scmp.lt.s32.totalorder %s733_s14, 3 }
  0x17   : > { %s147_s6 = scalar_lea.sflag [#allocation3], %s820_s25  ;;  %p595_p3 = pneg %p829_p0 }
  0x18   : > { %s606_s7 = scalar_lea.vmem %s162_s4, 128  ;;  %s735_s8 = smov [#allocation2]  }
  0x19   : > { %p607_p5 = scmp.ne.s32.totalorder %s162_s4, %s606_s7  ;;  %s611_s15 = sshll.u32 %s735_s8, 4  ;;  %s612_s15 = int_to_ptr.vmem [resolvable:$false] %s611_s15 }
  0x1a   : > { %s613_s16 = scalar_lea.vmem %s612_s15, 256  ;;  %p614_p4 = scmp.lt.s32.totalorder %s162_s4, %s612_s15 }
  0x1b   : > { %p609_p6 = pnand %p607_p5, %p595_p3  ;;  %p615_p10 = scmp.lt.s32.totalorder %s613_s16, %s606_s7 }
  0x1d   : > { %p610_p7 = pneg %p609_p6  ;;  %p616_p13 = por %p615_p10, %p614_p4 }
  0x1f   : > { %p617_p12 = pnand %p616_p13, %p610_p7 }
  0x21   : > { %620 = shalt.err (!%p617_p12)
}
  0x22   : > { %526 = dma.hbm_to_vmem [thread:$0]  (!%p829_p0), %s159_s30, 128, %s162_s4, %s147_s6  }
  0x23   : > { %p847_p5 = pnand %p505_p1, %p188_p2  ;;  %s502_s19 = sshll.u32 %s820_s25, 1 }
  0x24   : > { %s515_s20 = sshll.u32 %s729_s13, 5  ;;  %s172_s29 = scalar_lea.vmem [#allocation5], %s502_s19 }
  0x25   : > { %s181_s28 = scalar_lea.hbm %s943_s1, %s515_s20  ;;  %s183_s3 = sshll.u32 %s172_s29, 4  ;;  %s184_s3 = int_to_ptr.vmem [resolvable:$true] %s183_s3 }
  0x26   : > { %s169_s7 = scalar_lea.sflag [#allocation6], %s820_s25  ;;  %s634_s8 = scalar_lea.vmem %s184_s3, 32 }
  0x27   : > { %p635_p12 = scmp.ne.s32.totalorder %s184_s3, %s634_s8  ;;  %s736_s30 = smov [#allocation5]  }
  0x28   : > { %s639_s4 = sshll.u32 %s736_s30, 4  ;;  %s640_s4 = int_to_ptr.vmem [resolvable:$false] %s639_s4 }
  0x29   : > { %p637_p6 = pnand %p635_p12, %p595_p3  ;;  %s641_s6 = scalar_lea.vmem %s640_s4, 64 }
  0x2a   : > { %p642_p1 = scmp.lt.s32.totalorder %s184_s3, %s640_s4  ;;  %p643_p2 = scmp.lt.s32.totalorder %s641_s6, %s634_s8 }
  0x2b   : > { %p638_p7 = pneg %p637_p6 }
  0x2c   : > { %p644_p4 = por %p643_p2, %p642_p1 }
  0x2e   : > { %p645_p10 = pnand %p644_p4, %p638_p7 }
  0x30   : > { %648 = shalt.err (!%p645_p10)
}
  0x31   : > { %529 = dma.hbm_to_vmem [thread:$0]  (!%p829_p0), %s181_s28, 32, %s184_s3, %s169_s7  }
  0x32   : > { %192 = sbr.rel (%p847_p5) target bundleno = 151 (0x97), region = 28  ;;  %s865_s25 = sand.u32 (!%p847_p5), 1, %s717_s10  }
  0x33   : > { %s506_s15 = sshll.u32 (!%p847_p5), %s865_s25, 3  ;;  %s195_s16 = scalar_lea.sflag (!%p847_p5), [#allocation3], %s865_s25 }
  0x34   : > { %s198_s19 = scalar_lea.vmem (!%p847_p5), [#allocation2], %s506_s15 }
  0x37   : > { %700 = dma.done.wait (%p802_p8), %s195_s16, 128  }
  0x38   : > { %702 = vsyncadd (%p802_p8), %s195_s16, 4294967168  ;;  %s507_s5 = sshll.u32 %s865_s25, 1  ;;  %s204_s18 = scalar_lea.sflag [#allocation6], %s865_s25 }
  0x39   : > { %s875_s20 = scalar_lea.vmem [#allocation5], %s507_s5 }
  0x3a   : > { %704 = dma.done.wait (%p802_p8), %s204_s18, 32  }
  0x3b   : > { %706 = vsyncadd (%p802_p8), %s204_s18, 4294967264  ;;  %v241_v0 = vlaneseq  ;;  %s885_s26 = scalar_lea.vmem [#allocation7], %s507_s5  ;;  %v737_v2 = vmov 0.0   ;;  %vm251_vm1 = vcmask 1043456   ;;  %v246_v3 = vld [vmem:[%s198_s19] sm:$0xff]  ;;  %s516_s21 = sshll.u32 %s725_s12, 5 }
  0x3c   : > { %v249_v4 = vcombine.high %v246_v3, %v246_v3  ;;  %v252_v5 = vsel %vm251_vm1, %v246_v3, -inf  ;;  %v247_v24 = vld [vmem:[%s875_s20] sm:$0x3]  ;;  %v738_v58 = vmov 1966171168   ;;  %s380_s27 = sshll.u32 %s885_s26, 4  ;;  %s378_s3 = scalar_lea.hbm %s944_s2, %s516_s21  ;;  %s381_s27 = int_to_ptr.vmem [resolvable:$true] %s380_s27 }
  0x3d   : > { %vm881_vm0 = vcmp.lt.s32.totalorder %v241_v0, 256  ;;  %v253_v6 = vrot.slane %v252_v5, 4  ;;  %v297_v22 = vshrl.u32 %v241_v0, 7  ;;  %v343_v59 = vunpack.c.l.s4 %v738_v58  ;;  %s364_s7 = scalar_lea.sflag [#allocation4], %s865_s25  ;;  %s649_s8 = scalar_lea.vmem %s381_s27, 32 }
  0x3e   : > { %245 = vst.msk [vmem:[%s885_s26] sm:$0x3] %vm881_vm0, %v737_v2  ;;  %v259_v7 = vsel %vm251_vm1, %v249_v4, -inf  ;;  %p650_p8 = scmp.ne.s32.totalorder %s381_s27, %s649_s8  ;;  %s739_s30 = smov [#allocation7]  }
  0x3f   : > { %v254_v8 = vmax.f32 %v252_v5, %v253_v6  ;;  %v260_v9 = vrot.slane %v259_v7, 4  ;;  %v300_v23 = vsub.s32 0, %v297_v22  ;;  %v304_v25 = vsub.s32 1, %v297_v22  ;;  %s653_s4 = sshll.u32 %s739_s30, 4  ;;  %s654_s4 = int_to_ptr.vmem [resolvable:$false] %s653_s4 }
  0x40   : > { %p651_p0 = pnand %p650_p8, %p806_p9  ;;  %s655_s12 = scalar_lea.vmem %s654_s4, 64 }
  0x41   : > { %v255_v10 = vrot.slane %v254_v8, 2  ;;  %v261_v11 = vmax.f32 %v259_v7, %v260_v9  ;;  %v301_v26 = vrot.slane %v247_v24, %v300_v23  ;;  %v305_v27 = vrot.slane %v247_v24, %v304_v25  ;;  %p656_p13 = scmp.lt.s32.totalorder %s381_s27, %s654_s4  ;;  %p657_p5 = scmp.lt.s32.totalorder %s655_s12, %s649_s8 }
  0x42   : > { %p652_p3 = pneg %p651_p0 }
  0x43   : > { %v256_v12 = vmax.f32 %v254_v8, %v255_v10  ;;  %v262_v13 = vrot.slane %v261_v11, 2  ;;  %vm306_vm2 = vcmp.eq.s32.totalorder %v297_v22, %v301_v26  ;;  %vm307_vm3 = vcmp.eq.s32.totalorder %v297_v22, %v305_v27  ;;  %p658_p12 = por %p657_p5, %p656_p13 }
  0x44   : > { %v308_v32 = vsel %vm306_vm2, %v246_v3, 0.0  ;;  %v309_v36 = vsel %vm307_vm3, %v249_v4, 0.0  ;;  %v344_v4 = vunpack.c.0.s8 %v343_v59 }
  0x45   : > { %v257_v14 = vrot.slane %v256_v12, 1  ;;  %v263_v15 = vmax.f32 %v261_v11, %v262_v13  ;;  %v310_v37 = vsel %vm251_vm1, %v308_v32, 0.0  ;;  %v317_v40 = vsel %vm251_vm1, %v309_v36, 0.0  ;;  %v338_v11 = vld [vmem:[%s885_s26] sm:$0x3]  ;;  %p659_p6 = pnand %p658_p12, %p652_p3 }
  0x46   : > { %v311_v43 = vrot.slane %v310_v37, 4  ;;  %v318_v46 = vrot.slane %v317_v40, 4  ;;  %v347_v8 = vsub.s32 %v344_v4, %v297_v22 }
  0x47   : > { %v258_v16 = vmax.f32 %v256_v12, %v257_v14  ;;  %v264_v17 = vrot.slane %v263_v15, 1 }
  0x48   : > { %v312_v49 = vadd.f32 %v311_v43, %v310_v37  ;;  %v319_v51 = vadd.f32 %v318_v46, %v317_v40 }
  0x49   : > { %v265_v18 = vmax.f32 %v263_v15, %v264_v17 }
  0x4a   : > { %v313_v52 = vrot.slane %v312_v49, 2  ;;  %v320_v53 = vrot.slane %v319_v51, 2 }
  0x4b   : > { %v268_v19 = vcombine.low %v258_v16, %v265_v18 }
  0x4c   : > { %v314_v54 = vadd.f32 %v313_v52, %v312_v49  ;;  %v321_v55 = vadd.f32 %v320_v53, %v319_v51 }
  0x4d   : > { %v270_v20 = vsub.f32 %v246_v3, %v268_v19 }
  0x4e   : > { %v315_v56 = vrot.slane %v314_v54, 1  ;;  %v322_v57 = vrot.slane %v321_v55, 1 }
  0x4f   : > { %v271_v21 = vmul.f32 1.442695, %v270_v20 }
  0x50   : > { %v316_v62 = vadd.f32 %v315_v56, %v314_v54  ;;  %v323_v3 = vadd.f32 %v322_v57, %v321_v55 }
  0x51   : > { %587 = vpow2.f32 %v271_v21 }
  0x5e   : > { %v588_v28 = vpop.eup %587 }
  0x5f   : > { %v274_v29 = vcombine.high %v588_v28, %v588_v28  ;;  %v276_v30 = vsel %vm251_vm1, %v588_v28, 0.0 }
  0x60   : > { %v277_v31 = vrot.slane %v276_v30, 4 }
  0x61   : > { %v283_v33 = vsel %vm251_vm1, %v274_v29, 0.0 }
  0x62   : > { %v278_v34 = vadd.f32 %v277_v31, %v276_v30  ;;  %v284_v35 = vrot.slane %v283_v33, 4 }
  0x64   : > { %v279_v38 = vrot.slane %v278_v34, 2  ;;  %v285_v39 = vadd.f32 %v284_v35, %v283_v33 }
  0x66   : > { %v280_v41 = vadd.f32 %v279_v38, %v278_v34  ;;  %v286_v42 = vrot.slane %v285_v39, 2 }
  0x68   : > { %v281_v44 = vrot.slane %v280_v41, 1  ;;  %v287_v45 = vadd.f32 %v286_v42, %v285_v39 }
  0x6a   : > { %v282_v47 = vadd.f32 %v281_v44, %v280_v41  ;;  %v288_v48 = vrot.slane %v287_v45, 1 }
  0x6c   : > { %v289_v50 = vadd.f32 %v288_v48, %v287_v45  ;;  %589 = vlog2.f32 %v282_v47 }
  0x6e   : > { %591 = vlog2.f32 %v289_v50 }
  0x79   : > { %v590_v60 = vpop.eup %589 }
  0x7a   : > { %v291_v61 = vmul.f32 0.6931472, %v590_v60 }
  0x7b   : > { %v592_v63 = vpop.eup %591 }
  0x7c   : > { %v293_v0 = vmul.f32 0.6931472, %v592_v63  ;;  %v294_v2 = vadd.f32 %v291_v61, %v258_v16 }
  0x7e   : > { %v295_v5 = vadd.f32 %v293_v0, %v265_v18  ;;  %v324_v6 = vsub.f32 %v316_v62, %v294_v2 }
  0x80   : > { %v325_v7 = vsub.f32 %v323_v3, %v295_v5 }
  0x82   : > { %v341_v9 = vcombine.low %v324_v6, %v325_v7 }
  0x84   : > { %v348_v10 = vrot.slane %v341_v9, %v347_v8 }
  0x86   : > { %v355_v12 = vrot.slane %v348_v10, %v347_v8 }
  0x88   : > { %v357_v13 = vadd.f32 %v355_v12, %v338_v11 }
  0x8a   : > { %362 = vst.msk [vmem:[%s885_s26] sm:$0x3] %vm881_vm0, %v357_v13 }
  0x8b   : > { %662 = shalt.err (!%p659_p6)
}
  0x8c   : > { %s663_s6 = scalar_lea.hbm %s378_s3, 32  ;;  %s667_s16 = scalar_lea.hbm %s944_s2, 64 }
  0x8d   : > { %p664_p7 = scmp.ne.s32.totalorder %s378_s3, %s663_s6  ;;  %p668_p4 = scmp.lt.s32.totalorder %s378_s3, %s944_s2 }
  0x8e   : > { %p669_p10 = scmp.lt.s32.totalorder %s667_s16, %s663_s6 }
  0x8f   : > { %p665_p1 = pnand %p664_p7, %p806_p9 }
  0x90   : > { %p670_p8 = por %p669_p10, %p668_p4 }
  0x91   : > { %p666_p2 = pneg %p665_p1 }
  0x93   : > { %p671_p0 = pnand %p670_p8, %p666_p2 }
  0x95   : > { %674 = shalt.err (!%p671_p0)
}
  0x96   : > { %521 = dma.vmem_to_hbm [thread:$0]  (%p806_p9), %s381_s27, 32, %s378_s3, %s364_s7  }
  0x97 PF: > { %s392_s18 = sand.u32 1, %s713_s9   ;;  %p953_p3 = scmp.ge.s32.totalorder %s733_s14, 2 }
  0x98   : > { %s393_s20 = scalar_lea.sflag [#allocation4], %s392_s18 }
  0x99   : > { %p531_p13 = pnand %p953_p3, %p813_p11 }
  0x9b   : > { %p532_p5 = pneg %p531_p13 }
  0x9d   : > { %708 = dma.done.wait (%p532_p5), %s393_s20, 32  }
  0x9e   : > { %710 = vsyncadd (%p532_p5), %s393_s20, 4294967264  ;;  %s21_s14 = sadd.s32 1, %s733_s14   ;;  %s954_s9 = smov %s717_s10 }
  0x9f   : > { %p18_p12 = scmp.ge.s32.totalorder %s21_s14, 4   ;;  %s955_s10 = smov %s721_s11 }
  0xa0   : > { %s956_s11 = smov %s811_s23  ;;  %s957_s12 = smov %s729_s13 }
  0xa1   : > { %s958_s13 = smov %s960_s17  ;;  %20 = sbr.rel (!%p18_p12) target bundleno = 8 (0x8), region = 90 }
  0xa6   :  { %398 = vsyncpa [#allocation3], 1 }
  0xa7   :  { %400 = vsyncpa [#allocation3 + $0x1], 1 }
  0xa8   :  { %401 = vsyncpa [#allocation6], 1 }
  0xa9   :  { %403 = vsyncpa [#allocation6 + $0x1], 1 }
  0xaa   :  { %404 = vsyncpa [#allocation4], 1 }
  0xab   :  { %406 = vsyncpa [#allocation4 + $0x1], 1 }

</bundles_post_ra>
